<compile_context>
chip_gen: v7x
topology: tpu7x:2x2x1
jax: 0.10.0
libtpu: 0.0.40
codegen_flags: <defaults>
</compile_context>

<pallas_src>
import functools

import jax
import jax.numpy as jnp
from jax.experimental import pallas as pl
from jax.experimental.pallas import tpu as pltpu


def _choose_tile(dim, preferred):
    """Largest preferred tile that evenly divides `dim`, else the full dim."""
    for t in preferred:
        if t <= dim and dim % t == 0:
            return t
    return dim


# ---------------------------------------------------------------------------
# Kernel 1: tiled dense layer  y = x @ w + b   (w already pre-transposed (K, Nout))
# ---------------------------------------------------------------------------
def linear_kernel(x_ref, w_ref, b_ref, o_ref, acc_ref):
    k = pl.program_id(2)

    @pl.when(k == 0)
    def _():
        acc_ref[...] = jnp.zeros_like(acc_ref)

    acc_ref[...] += jnp.dot(
        x_ref[...], w_ref[...], preferred_element_type=jnp.float32
    )

    @pl.when(k == pl.num_programs(2) - 1)
    def _():
        o_ref[...] = (acc_ref[...] + b_ref[...]).astype(o_ref.dtype)


def pallas_linear(x, w_t, b):
    """x: (M, K) f32, w_t: (K, Nout) f32 (pre-transposed), b: (Nout,) -> (M, Nout)."""
    M, K = x.shape
    Nout = w_t.shape[1]
    b2 = b.reshape(1, Nout)

    # Tile caps sized for the smallest-VMEM part (v7x, 64 MiB): tm,tn<=256, tk<=512.
    tm = _choose_tile(M, (256, 128, 64, 32, 16, 8))
    tn = _choose_tile(Nout, (256, 128))
    tk = _choose_tile(K, (512, 256, 128))
    grid = (M // tm, Nout // tn, K // tk)

    return pl.pallas_call(
        linear_kernel,
        out_shape=jax.ShapeDtypeStruct((M, Nout), x.dtype),
        grid_spec=pltpu.PrefetchScalarGridSpec(
            num_scalar_prefetch=0,
            grid=grid,
            in_specs=[
                pl.BlockSpec((tm, tk), lambda i, j, k: (i, k)),
                pl.BlockSpec((tk, tn), lambda i, j, k: (k, j)),
                pl.BlockSpec((1, tn), lambda i, j, k: (0, j)),
            ],
            out_specs=pl.BlockSpec((tm, tn), lambda i, j, k: (i, j)),
            scratch_shapes=[pltpu.VMEM((tm, tn), jnp.float32)],
        ),
        compiler_params=pltpu.CompilerParams(
            dimension_semantics=("parallel", "parallel", "arbitrary"),
            vmem_limit_bytes=32 * 1024 * 1024,
        ),
    )(x, w_t, b2)


# ---------------------------------------------------------------------------
# Kernel 2: fused per-batch multi-head attention on the packed qkv activation
# ---------------------------------------------------------------------------
def attn_kernel(qkv_ref, o_ref, *, num_heads, scale):
    # qkv_ref block: (1, N, 3C), channels packed [q | k | v], each split into
    # num_heads contiguous head_dim chunks (matches the torch reshape/permute).
    _, N, C3 = qkv_ref.shape
    C = C3 // 3
    hd = C // num_heads

    qkv = qkv_ref[0]                                  # (N, 3C) f32, single load
    head_outs = []
    for h in range(num_heads):                        # static unroll (H is small)
        q = qkv[:, h * hd:(h + 1) * hd]               # (N, hd)
        k = qkv[:, C + h * hd:C + (h + 1) * hd]       # (N, hd)
        v = qkv[:, 2 * C + h * hd:2 * C + (h + 1) * hd]
        s = jnp.dot(q, k.T, preferred_element_type=jnp.float32) * scale  # (N, N)
        s = s - jnp.max(s, axis=-1, keepdims=True)
        p = jnp.exp(s)
        p = p * pl.reciprocal(jnp.sum(p, axis=-1, keepdims=True), approx=True)
        head_outs.append(jnp.dot(p, v, preferred_element_type=jnp.float32))
    # One lane-dense (N, C) store instead of per-head masked partial stores.
    o_ref[0] = jnp.concatenate(head_outs, axis=-1).astype(o_ref.dtype)


def pallas_attention(qkv, num_heads, scale):
    """qkv: (B, N, 3C) packed q|k|v -> (B, N, C) attention output, heads merged."""
    B, N, C3 = qkv.shape
    C = C3 // 3
    return pl.pallas_call(
        functools.partial(attn_kernel, num_heads=num_heads, scale=scale),
        out_shape=jax.ShapeDtypeStruct((B, N, C), qkv.dtype),
        grid=(B,),
        in_specs=[pl.BlockSpec((1, N, C3), lambda b: (b, 0, 0))],
        out_specs=pl.BlockSpec((1, N, C), lambda b: (b, 0, 0)),
        compiler_params=pltpu.CompilerParams(
            dimension_semantics=("parallel",),
            vmem_limit_bytes=32 * 1024 * 1024,
        ),
    )(qkv)


# ---------------------------------------------------------------------------
# Full forward pass (matches Attention3D.forward; dropout p=0.0 -> identity)
# ---------------------------------------------------------------------------
def attention3d_forward(x, params, num_heads):
    B, N, C = x.shape
    hd = C // num_heads
    scale = hd ** (-0.5)

    # Pre-transpose the torch-layout (out, in) weights once, outside the kernels.
    qkv_w_t = params["qkv_w"].T      # (C, 3C)
    proj_w_t = params["proj_w"].T    # (C, C)

    # qkv = self.qkv(x) -> packed (B, N, 3C); stays packed (no XLA permute /
    # head-split round trip between pallas_calls).
    qkv = pallas_linear(x.reshape(B * N, C), qkv_w_t, params["qkv_b"])
    qkv = qkv.reshape(B, N, 3 * C)

    # softmax(q k^T * scale) @ v, all heads fused; output already (B, N, C).
    out = pallas_attention(qkv, num_heads, scale)

    # out = self.proj(out)
    out = pallas_linear(out.reshape(B * N, C), proj_w_t, params["proj_b"])
    return out.reshape(B, N, C)


# ---------------------------------------------------------------------------
# Deterministic parameter init (shapes from Attention3D.__init__)
# ---------------------------------------------------------------------------
def init_params(key, dim):
    k1, k2, k3, k4 = jax.random.split(key, 4)
    return {
        "qkv_w": 0.02 * jax.random.normal(k1, (3 * dim, dim), jnp.float32),
        "qkv_b": 0.02 * jax.random.normal(k2, (3 * dim,), jnp.float32),
        "proj_w": 0.02 * jax.random.normal(k3, (dim, dim), jnp.float32),
        "proj_b": 0.02 * jax.random.normal(k4, (dim,), jnp.float32),
    }


# Pure-JAX reference for a sanity check
def reference_forward(x, params, num_heads):
    B, N, C = x.shape
    hd = C // num_heads
    scale = hd ** (-0.5)
    qkv = x @ params["qkv_w"].T + params["qkv_b"]
    qkv = qkv.reshape(B, N, 3, num_heads, hd).transpose(2, 0, 3, 1, 4)
    q, k, v = qkv[0], qkv[1], qkv[2]
    attn = jnp.einsum("bhqd,bhkd->bhqk", q, k) * scale
    attn = jax.nn.softmax(attn, axis=-1)
    out = jnp.einsum("bhqk,bhkd->bhqd", attn, v)
    out = out.transpose(0, 2, 1, 3).reshape(B, N, C)
    return out @ params["proj_w"].T + params["proj_b"]


if __name__ == "__main__":
    B, N, C = 2, 8, 32
    NUM_HEADS = 8                      # head_dim = 4

    key = jax.random.PRNGKey(0)
    kx, kp = jax.random.split(key)
    x = jax.random.normal(kx, (B, N, C), jnp.float32)
    params = init_params(kp, C)

    fwd = jax.jit(functools.partial(attention3d_forward, num_heads=NUM_HEADS))
    out = fwd(x, params)
    out = jax.block_until_ready(out)

    ref = reference_forward(x, params, NUM_HEADS)
    assert out.shape == (B, N, C)
    # Tolerance leaves room for the approx (EUP) reciprocal in the softmax.
    assert jnp.allclose(out, ref, atol=1e-4, rtol=1e-4), "mismatch vs reference"

    print("KERNEL_OK")
</pallas_src>

<mosaic_0001>
module attributes {stable_mosaic.version = 11 : i64} {
  func.func @linear_kernel(%arg0: i32, %arg1: i32, %arg2: i32, %arg3: memref<16x32xf32, #tpu.memory_space<vmem>>, %arg4: memref<32x96xf32, #tpu.memory_space<vmem>>, %arg5: memref<1x96xf32, #tpu.memory_space<vmem>>, %arg6: memref<16x96xf32, #tpu.memory_space<vmem>>, %arg7: memref<16x96xf32, #tpu.memory_space<vmem>>) attributes {dimension_semantics = [#tpu.dimension_semantics<parallel>, #tpu.dimension_semantics<parallel>, #tpu.dimension_semantics<arbitrary>], iteration_bounds = array<i64: 1, 1, 1>, scalar_prefetch = 0 : i64, scratch_operands = 1 : i64, tpu.core_type = #tpu.core_type<tc>, window_params = [{transform_indices = @transform_0, window_bounds = array<i64: 16, 32>}, {transform_indices = @transform_1, window_bounds = array<i64: 32, 96>}, {transform_indices = @transform_2, window_bounds = array<i64: 1, 96>}, {transform_indices = @transform_3, window_bounds = array<i64: 16, 96>}]} {
    %c0_i32 = arith.constant 0 : i32
    %0 = arith.cmpi eq, %arg2, %c0_i32 : i32
    %1 = arith.extui %0 : i1 to i32
    %c0_i32_0 = arith.constant 0 : i32
    %2 = arith.cmpi ne, %1, %c0_i32_0 : i32
    scf.if %2 {
      %cst_10 = arith.constant 0.000000e+00 : f32
      %12 = vector.broadcast %cst_10 : f32 to vector<16x96xf32>
      %c0_11 = arith.constant 0 : index
      %c0_12 = arith.constant 0 : index
      %13 = vector.load %arg7[%c0_11, %c0_12] : memref<16x96xf32, #tpu.memory_space<vmem>>, vector<16x96xf32>
      tpu.vector_store %arg7[%c0_11, %c0_12], %12 {strides = array<i32>} : memref<16x96xf32, #tpu.memory_space<vmem>>, vector<16x96xf32>,
    } else {
    }
    %c0 = arith.constant 0 : index
    %c0_1 = arith.constant 0 : index
    %3 = vector.load %arg7[%c0, %c0_1] : memref<16x96xf32, #tpu.memory_space<vmem>>, vector<16x96xf32>
    %c0_2 = arith.constant 0 : index
    %c0_3 = arith.constant 0 : index
    %4 = vector.load %arg3[%c0_2, %c0_3] : memref<16x32xf32, #tpu.memory_space<vmem>>, vector<16x32xf32>
    %c0_4 = arith.constant 0 : index
    %c0_5 = arith.constant 0 : index
    %5 = vector.load %arg4[%c0_4, %c0_5] : memref<32x96xf32, #tpu.memory_space<vmem>>, vector<32x96xf32>
    %cst = arith.constant dense<0.000000e+00> : vector<16x96xf32>
    %6 = tpu.matmul %4, %5, %cst {dimension_numbers = #tpu.dot_dimension_numbers<[1], [0], [0], [1], [0, 0, 1, 1], [], []>} : vector<16x32xf32>, vector<32x96xf32>, vector<16x96xf32> -> vector<16x96xf32>
    %7 = arith.addf %3, %6 : vector<16x96xf32>
    %c0_6 = arith.constant 0 : index
    %c0_7 = arith.constant 0 : index
    %8 = vector.load %arg7[%c0_6, %c0_7] : memref<16x96xf32, #tpu.memory_space<vmem>>, vector<16x96xf32>
    tpu.vector_store %arg7[%c0_6, %c0_7], %7 {strides = array<i32>} : memref<16x96xf32, #tpu.memory_space<vmem>>, vector<16x96xf32>,
    %c0_i32_8 = arith.constant 0 : i32
    %9 = arith.cmpi eq, %arg2, %c0_i32_8 : i32
    %10 = arith.extui %9 : i1 to i32
    %c0_i32_9 = arith.constant 0 : i32
    %11 = arith.cmpi ne, %10, %c0_i32_9 : i32
    scf.if %11 {
      %c0_10 = arith.constant 0 : index
      %c0_11 = arith.constant 0 : index
      %12 = vector.load %arg7[%c0_10, %c0_11] : memref<16x96xf32, #tpu.memory_space<vmem>>, vector<16x96xf32>
      %c0_12 = arith.constant 0 : index
      %c0_13 = arith.constant 0 : index
      %13 = vector.load %arg5[%c0_12, %c0_13] : memref<1x96xf32, #tpu.memory_space<vmem>>, vector<1x96xf32>
      %14 = vector.broadcast %13 : vector<1x96xf32> to vector<16x96xf32>
      %15 = arith.addf %12, %14 : vector<16x96xf32>
      %c0_14 = arith.constant 0 : index
      %c0_15 = arith.constant 0 : index
      %16 = vector.load %arg6[%c0_14, %c0_15] : memref<16x96xf32, #tpu.memory_space<vmem>>, vector<16x96xf32>
      tpu.vector_store %arg6[%c0_14, %c0_15], %15 {strides = array<i32>} : memref<16x96xf32, #tpu.memory_space<vmem>>, vector<16x96xf32>,
    } else {
    }
    return
  }
  func.func @transform_0(%arg0: i32, %arg1: i32, %arg2: i32) -> (i32, i32) {
    %c0_i32 = arith.constant 0 : i32
    return %arg0, %arg2 : i32, i32
  }
  func.func @transform_1(%arg0: i32, %arg1: i32, %arg2: i32) -> (i32, i32) {
    %c0_i32 = arith.constant 0 : i32
    return %arg2, %arg1 : i32, i32
  }
  func.func @transform_2(%arg0: i32, %arg1: i32, %arg2: i32) -> (i32, i32) {
    %c0_i32 = arith.constant 0 : i32
    %c0_i32_0 = arith.constant 0 : i32
    return %c0_i32, %arg1 : i32, i32
  }
  func.func @transform_3(%arg0: i32, %arg1: i32, %arg2: i32) -> (i32, i32) {
    %c0_i32 = arith.constant 0 : i32
    return %arg0, %arg1 : i32, i32
  }
}

module attributes {stable_mosaic.version = 11 : i64} {
  func.func @linear_kernel(%arg0: i32, %arg1: i32, %arg2: i32, %arg3: memref<16x32xf32, #tpu.memory_space<vmem>>, %arg4: memref<32x32xf32, #tpu.memory_space<vmem>>, %arg5: memref<1x32xf32, #tpu.memory_space<vmem>>, %arg6: memref<16x32xf32, #tpu.memory_space<vmem>>, %arg7: memref<16x32xf32, #tpu.memory_space<vmem>>) attributes {dimension_semantics = [#tpu.dimension_semantics<parallel>, #tpu.dimension_semantics<parallel>, #tpu.dimension_semantics<arbitrary>], iteration_bounds = array<i64: 1, 1, 1>, scalar_prefetch = 0 : i64, scratch_operands = 1 : i64, tpu.core_type = #tpu.core_type<tc>, window_params = [{transform_indices = @transform_0, window_bounds = array<i64: 16, 32>}, {transform_indices = @transform_1, window_bounds = array<i64: 32, 32>}, {transform_indices = @transform_2, window_bounds = array<i64: 1, 32>}, {transform_indices = @transform_3, window_bounds = array<i64: 16, 32>}]} {
    %c0_i32 = arith.constant 0 : i32
    %0 = arith.cmpi eq, %arg2, %c0_i32 : i32
    %1 = arith.extui %0 : i1 to i32
    %c0_i32_0 = arith.constant 0 : i32
    %2 = arith.cmpi ne, %1, %c0_i32_0 : i32
    scf.if %2 {
      %cst_10 = arith.constant 0.000000e+00 : f32
      %12 = vector.broadcast %cst_10 : f32 to vector<16x32xf32>
      %c0_11 = arith.constant 0 : index
      %c0_12 = arith.constant 0 : index
      %13 = vector.load %arg7[%c0_11, %c0_12] : memref<16x32xf32, #tpu.memory_space<vmem>>, vector<16x32xf32>
      tpu.vector_store %arg7[%c0_11, %c0_12], %12 {strides = array<i32>} : memref<16x32xf32, #tpu.memory_space<vmem>>, vector<16x32xf32>,
    } else {
    }
    %c0 = arith.constant 0 : index
    %c0_1 = arith.constant 0 : index
    %3 = vector.load %arg7[%c0, %c0_1] : memref<16x32xf32, #tpu.memory_space<vmem>>, vector<16x32xf32>
    %c0_2 = arith.constant 0 : index
    %c0_3 = arith.constant 0 : index
    %4 = vector.load %arg3[%c0_2, %c0_3] : memref<16x32xf32, #tpu.memory_space<vmem>>, vector<16x32xf32>
    %c0_4 = arith.constant 0 : index
    %c0_5 = arith.constant 0 : index
    %5 = vector.load %arg4[%c0_4, %c0_5] : memref<32x32xf32, #tpu.memory_space<vmem>>, vector<32x32xf32>
    %cst = arith.constant dense<0.000000e+00> : vector<16x32xf32>
    %6 = tpu.matmul %4, %5, %cst {dimension_numbers = #tpu.dot_dimension_numbers<[1], [0], [0], [1], [0, 0, 1, 1], [], []>} : vector<16x32xf32>, vector<32x32xf32>, vector<16x32xf32> -> vector<16x32xf32>
    %7 = arith.addf %3, %6 : vector<16x32xf32>
    %c0_6 = arith.constant 0 : index
    %c0_7 = arith.constant 0 : index
    %8 = vector.load %arg7[%c0_6, %c0_7] : memref<16x32xf32, #tpu.memory_space<vmem>>, vector<16x32xf32>
    tpu.vector_store %arg7[%c0_6, %c0_7], %7 {strides = array<i32>} : memref<16x32xf32, #tpu.memory_space<vmem>>, vector<16x32xf32>,
    %c0_i32_8 = arith.constant 0 : i32
    %9 = arith.cmpi eq, %arg2, %c0_i32_8 : i32
    %10 = arith.extui %9 : i1 to i32
    %c0_i32_9 = arith.constant 0 : i32
    %11 = arith.cmpi ne, %10, %c0_i32_9 : i32
    scf.if %11 {
      %c0_10 = arith.constant 0 : index
      %c0_11 = arith.constant 0 : index
      %12 = vector.load %arg7[%c0_10, %c0_11] : memref<16x32xf32, #tpu.memory_space<vmem>>, vector<16x32xf32>
      %c0_12 = arith.constant 0 : index
      %c0_13 = arith.constant 0 : index
      %13 = vector.load %arg5[%c0_12, %c0_13] : memref<1x32xf32, #tpu.memory_space<vmem>>, vector<1x32xf32>
      %14 = vector.broadcast %13 : vector<1x32xf32> to vector<16x32xf32>
      %15 = arith.addf %12, %14 : vector<16x32xf32>
      %c0_14 = arith.constant 0 : index
      %c0_15 = arith.constant 0 : index
      %16 = vector.load %arg6[%c0_14, %c0_15] : memref<16x32xf32, #tpu.memory_space<vmem>>, vector<16x32xf32>
      tpu.vector_store %arg6[%c0_14, %c0_15], %15 {strides = array<i32>} : memref<16x32xf32, #tpu.memory_space<vmem>>, vector<16x32xf32>,
    } else {
    }
    return
  }
  func.func @transform_0(%arg0: i32, %arg1: i32, %arg2: i32) -> (i32, i32) {
    %c0_i32 = arith.constant 0 : i32
    return %arg0, %arg2 : i32, i32
  }
  func.func @transform_1(%arg0: i32, %arg1: i32, %arg2: i32) -> (i32, i32) {
    %c0_i32 = arith.constant 0 : i32
    return %arg2, %arg1 : i32, i32
  }
  func.func @transform_2(%arg0: i32, %arg1: i32, %arg2: i32) -> (i32, i32) {
    %c0_i32 = arith.constant 0 : i32
    %c0_i32_0 = arith.constant 0 : i32
    return %c0_i32, %arg1 : i32, i32
  }
  func.func @transform_3(%arg0: i32, %arg1: i32, %arg2: i32) -> (i32, i32) {
    %c0_i32 = arith.constant 0 : i32
    return %arg0, %arg1 : i32, i32
  }
}

module attributes {stable_mosaic.version = 11 : i64} {
  func.func @attn_kernel(%arg0: i32, %arg1: memref<1x8x96xf32, #tpu.memory_space<vmem>>, %arg2: memref<1x8x32xf32, #tpu.memory_space<vmem>>) attributes {dimension_semantics = [#tpu.dimension_semantics<parallel>], iteration_bounds = array<i64: 2>, scalar_prefetch = 0 : i64, scratch_operands = 0 : i64, tpu.core_type = #tpu.core_type<tc>, window_params = [{transform_indices = @transform_0, window_bounds = array<i64: 1, 8, 96>}, {transform_indices = @transform_1, window_bounds = array<i64: 1, 8, 32>}]} {
    %c0 = arith.constant 0 : index
    %c0_0 = arith.constant 0 : index
    %c0_1 = arith.constant 0 : index
    %0 = vector.load %arg1[%c0, %c0_0, %c0_1] : memref<1x8x96xf32, #tpu.memory_space<vmem>>, vector<1x8x96xf32>
    %1 = vector.shape_cast %0 : vector<1x8x96xf32> to vector<8x96xf32>
    %2 = vector.extract_strided_slice %1 {offsets = [0, 0], sizes = [8, 4], strides = [1, 1]} : vector<8x96xf32> to vector<8x4xf32>
    %3 = vector.extract_strided_slice %1 {offsets = [0, 32], sizes = [8, 4], strides = [1, 1]} : vector<8x96xf32> to vector<8x4xf32>
    %4 = vector.extract_strided_slice %1 {offsets = [0, 64], sizes = [8, 4], strides = [1, 1]} : vector<8x96xf32> to vector<8x4xf32>
    %5 = tpu.transpose %3, [1, 0] : vector<8x4xf32> -> vector<4x8xf32>
    %cst = arith.constant dense<0.000000e+00> : vector<8x8xf32>
    %6 = tpu.matmul %2, %5, %cst {dimension_numbers = #tpu.dot_dimension_numbers<[1], [0], [0], [1], [0, 0, 1, 1], [], []>} : vector<8x4xf32>, vector<4x8xf32>, vector<8x8xf32> -> vector<8x8xf32>
    %cst_2 = arith.constant 5.000000e-01 : f32
    %7 = vector.broadcast %cst_2 : f32 to vector<8x8xf32>
    %8 = arith.mulf %6, %7 : vector<8x8xf32>
    %cst_3 = arith.constant dense<0xFF800000> : vector<8xf32>
    %9 = vector.multi_reduction <maximumf>, %8, %cst_3 [1] : vector<8x8xf32> to vector<8xf32>
    %10 = vector.shape_cast %9 : vector<8xf32> to vector<8x1xf32>
    %11 = vector.broadcast %10 : vector<8x1xf32> to vector<8x8xf32>
    %12 = arith.subf %8, %11 : vector<8x8xf32>
    %13 = math.exp %12 : vector<8x8xf32>
    %cst_4 = arith.constant dense<0.000000e+00> : vector<8xf32>
    %14 = vector.multi_reduction <add>, %13, %cst_4 [1] : vector<8x8xf32> to vector<8xf32>
    %15 = vector.shape_cast %14 : vector<8xf32> to vector<8x1xf32>
    %16 = tpu.reciprocal %15 {approx = true} : vector<8x1xf32> -> vector<8x1xf32>
    %17 = vector.broadcast %16 : vector<8x1xf32> to vector<8x8xf32>
    %18 = arith.mulf %13, %17 : vector<8x8xf32>
    %cst_5 = arith.constant dense<0.000000e+00> : vector<8x4xf32>
    %19 = tpu.matmul %18, %4, %cst_5 {dimension_numbers = #tpu.dot_dimension_numbers<[1], [0], [0], [1], [0, 0, 1, 1], [], []>} : vector<8x8xf32>, vector<8x4xf32>, vector<8x4xf32> -> vector<8x4xf32>
    %20 = vector.extract_strided_slice %1 {offsets = [0, 4], sizes = [8, 4], strides = [1, 1]} : vector<8x96xf32> to vector<8x4xf32>
    %21 = vector.extract_strided_slice %1 {offsets = [0, 36], sizes = [8, 4], strides = [1, 1]} : vector<8x96xf32> to vector<8x4xf32>
    %22 = vector.extract_strided_slice %1 {offsets = [0, 68], sizes = [8, 4], strides = [1, 1]} : vector<8x96xf32> to vector<8x4xf32>
    %23 = tpu.transpose %21, [1, 0] : vector<8x4xf32> -> vector<4x8xf32>
    %cst_6 = arith.constant dense<0.000000e+00> : vector<8x8xf32>
    %24 = tpu.matmul %20, %23, %cst_6 {dimension_numbers = #tpu.dot_dimension_numbers<[1], [0], [0], [1], [0, 0, 1, 1], [], []>} : vector<8x4xf32>, vector<4x8xf32>, vector<8x8xf32> -> vector<8x8xf32>
    %cst_7 = arith.constant 5.000000e-01 : f32
    %25 = vector.broadcast %cst_7 : f32 to vector<8x8xf32>
    %26 = arith.mulf %24, %25 : vector<8x8xf32>
    %cst_8 = arith.constant dense<0xFF800000> : vector<8xf32>
    %27 = vector.multi_reduction <maximumf>, %26, %cst_8 [1] : vector<8x8xf32> to vector<8xf32>
    %28 = vector.shape_cast %27 : vector<8xf32> to vector<8x1xf32>
    %29 = vector.broadcast %28 : vector<8x1xf32> to vector<8x8xf32>
    %30 = arith.subf %26, %29 : vector<8x8xf32>
    %31 = math.exp %30 : vector<8x8xf32>
    %cst_9 = arith.constant dense<0.000000e+00> : vector<8xf32>
    %32 = vector.multi_reduction <add>, %31, %cst_9 [1] : vector<8x8xf32> to vector<8xf32>
    %33 = vector.shape_cast %32 : vector<8xf32> to vector<8x1xf32>
    %34 = tpu.reciprocal %33 {approx = true} : vector<8x1xf32> -> vector<8x1xf32>
    %35 = vector.broadcast %34 : vector<8x1xf32> to vector<8x8xf32>
    %36 = arith.mulf %31, %35 : vector<8x8xf32>
    %cst_10 = arith.constant dense<0.000000e+00> : vector<8x4xf32>
    %37 = tpu.matmul %36, %22, %cst_10 {dimension_numbers = #tpu.dot_dimension_numbers<[1], [0], [0], [1], [0, 0, 1, 1], [], []>} : vector<8x8xf32>, vector<8x4xf32>, vector<8x4xf32> -> vector<8x4xf32>
    %38 = vector.extract_strided_slice %1 {offsets = [0, 8], sizes = [8, 4], strides = [1, 1]} : vector<8x96xf32> to vector<8x4xf32>
    %39 = vector.extract_strided_slice %1 {offsets = [0, 40], sizes = [8, 4], strides = [1, 1]} : vector<8x96xf32> to vector<8x4xf32>
    %40 = vector.extract_strided_slice %1 {offsets = [0, 72], sizes = [8, 4], strides = [1, 1]} : vector<8x96xf32> to vector<8x4xf32>
    %41 = tpu.transpose %39, [1, 0] : vector<8x4xf32> -> vector<4x8xf32>
    %cst_11 = arith.constant dense<0.000000e+00> : vector<8x8xf32>
    %42 = tpu.matmul %38, %41, %cst_11 {dimension_numbers = #tpu.dot_dimension_numbers<[1], [0], [0], [1], [0, 0, 1, 1], [], []>} : vector<8x4xf32>, vector<4x8xf32>, vector<8x8xf32> -> vector<8x8xf32>
    %cst_12 = arith.constant 5.000000e-01 : f32
    %43 = vector.broadcast %cst_12 : f32 to vector<8x8xf32>
    %44 = arith.mulf %42, %43 : vector<8x8xf32>
    %cst_13 = arith.constant dense<0xFF800000> : vector<8xf32>
    %45 = vector.multi_reduction <maximumf>, %44, %cst_13 [1] : vector<8x8xf32> to vector<8xf32>
    %46 = vector.shape_cast %45 : vector<8xf32> to vector<8x1xf32>
    %47 = vector.broadcast %46 : vector<8x1xf32> to vector<8x8xf32>
    %48 = arith.subf %44, %47 : vector<8x8xf32>
    %49 = math.exp %48 : vector<8x8xf32>
    %cst_14 = arith.constant dense<0.000000e+00> : vector<8xf32>
    %50 = vector.multi_reduction <add>, %49, %cst_14 [1] : vector<8x8xf32> to vector<8xf32>
    %51 = vector.shape_cast %50 : vector<8xf32> to vector<8x1xf32>
    %52 = tpu.reciprocal %51 {approx = true} : vector<8x1xf32> -> vector<8x1xf32>
    %53 = vector.broadcast %52 : vector<8x1xf32> to vector<8x8xf32>
    %54 = arith.mulf %49, %53 : vector<8x8xf32>
    %cst_15 = arith.constant dense<0.000000e+00> : vector<8x4xf32>
    %55 = tpu.matmul %54, %40, %cst_15 {dimension_numbers = #tpu.dot_dimension_numbers<[1], [0], [0], [1], [0, 0, 1, 1], [], []>} : vector<8x8xf32>, vector<8x4xf32>, vector<8x4xf32> -> vector<8x4xf32>
    %56 = vector.extract_strided_slice %1 {offsets = [0, 12], sizes = [8, 4], strides = [1, 1]} : vector<8x96xf32> to vector<8x4xf32>
    %57 = vector.extract_strided_slice %1 {offsets = [0, 44], sizes = [8, 4], strides = [1, 1]} : vector<8x96xf32> to vector<8x4xf32>
    %58 = vector.extract_strided_slice %1 {offsets = [0, 76], sizes = [8, 4], strides = [1, 1]} : vector<8x96xf32> to vector<8x4xf32>
    %59 = tpu.transpose %57, [1, 0] : vector<8x4xf32> -> vector<4x8xf32>
    %cst_16 = arith.constant dense<0.000000e+00> : vector<8x8xf32>
    %60 = tpu.matmul %56, %59, %cst_16 {dimension_numbers = #tpu.dot_dimension_numbers<[1], [0], [0], [1], [0, 0, 1, 1], [], []>} : vector<8x4xf32>, vector<4x8xf32>, vector<8x8xf32> -> vector<8x8xf32>
    %cst_17 = arith.constant 5.000000e-01 : f32
    %61 = vector.broadcast %cst_17 : f32 to vector<8x8xf32>
    %62 = arith.mulf %60, %61 : vector<8x8xf32>
    %cst_18 = arith.constant dense<0xFF800000> : vector<8xf32>
    %63 = vector.multi_reduction <maximumf>, %62, %cst_18 [1] : vector<8x8xf32> to vector<8xf32>
    %64 = vector.shape_cast %63 : vector<8xf32> to vector<8x1xf32>
    %65 = vector.broadcast %64 : vector<8x1xf32> to vector<8x8xf32>
    %66 = arith.subf %62, %65 : vector<8x8xf32>
    %67 = math.exp %66 : vector<8x8xf32>
    %cst_19 = arith.constant dense<0.000000e+00> : vector<8xf32>
    %68 = vector.multi_reduction <add>, %67, %cst_19 [1] : vector<8x8xf32> to vector<8xf32>
    %69 = vector.shape_cast %68 : vector<8xf32> to vector<8x1xf32>
    %70 = tpu.reciprocal %69 {approx = true} : vector<8x1xf32> -> vector<8x1xf32>
    %71 = vector.broadcast %70 : vector<8x1xf32> to vector<8x8xf32>
    %72 = arith.mulf %67, %71 : vector<8x8xf32>
    %cst_20 = arith.constant dense<0.000000e+00> : vector<8x4xf32>
    %73 = tpu.matmul %72, %58, %cst_20 {dimension_numbers = #tpu.dot_dimension_numbers<[1], [0], [0], [1], [0, 0, 1, 1], [], []>} : vector<8x8xf32>, vector<8x4xf32>, vector<8x4xf32> -> vector<8x4xf32>
    %74 = vector.extract_strided_slice %1 {offsets = [0, 16], sizes = [8, 4], strides = [1, 1]} : vector<8x96xf32> to vector<8x4xf32>
    %75 = vector.extract_strided_slice %1 {offsets = [0, 48], sizes = [8, 4], strides = [1, 1]} : vector<8x96xf32> to vector<8x4xf32>
    %76 = vector.extract_strided_slice %1 {offsets = [0, 80], sizes = [8, 4], strides = [1, 1]} : vector<8x96xf32> to vector<8x4xf32>
    %77 = tpu.transpose %75, [1, 0] : vector<8x4xf32> -> vector<4x8xf32>
    %cst_21 = arith.constant dense<0.000000e+00> : vector<8x8xf32>
    %78 = tpu.matmul %74, %77, %cst_21 {dimension_numbers = #tpu.dot_dimension_numbers<[1], [0], [0], [1], [0, 0, 1, 1], [], []>} : vector<8x4xf32>, vector<4x8xf32>, vector<8x8xf32> -> vector<8x8xf32>
    %cst_22 = arith.constant 5.000000e-01 : f32
    %79 = vector.broadcast %cst_22 : f32 to vector<8x8xf32>
    %80 = arith.mulf %78, %79 : vector<8x8xf32>
    %cst_23 = arith.constant dense<0xFF800000> : vector<8xf32>
    %81 = vector.multi_reduction <maximumf>, %80, %cst_23 [1] : vector<8x8xf32> to vector<8xf32>
    %82 = vector.shape_cast %81 : vector<8xf32> to vector<8x1xf32>
    %83 = vector.broadcast %82 : vector<8x1xf32> to vector<8x8xf32>
    %84 = arith.subf %80, %83 : vector<8x8xf32>
    %85 = math.exp %84 : vector<8x8xf32>
    %cst_24 = arith.constant dense<0.000000e+00> : vector<8xf32>
    %86 = vector.multi_reduction <add>, %85, %cst_24 [1] : vector<8x8xf32> to vector<8xf32>
    %87 = vector.shape_cast %86 : vector<8xf32> to vector<8x1xf32>
    %88 = tpu.reciprocal %87 {approx = true} : vector<8x1xf32> -> vector<8x1xf32>
    %89 = vector.broadcast %88 : vector<8x1xf32> to vector<8x8xf32>
    %90 = arith.mulf %85, %89 : vector<8x8xf32>
    %cst_25 = arith.constant dense<0.000000e+00> : vector<8x4xf32>
    %91 = tpu.matmul %90, %76, %cst_25 {dimension_numbers = #tpu.dot_dimension_numbers<[1], [0], [0], [1], [0, 0, 1, 1], [], []>} : vector<8x8xf32>, vector<8x4xf32>, vector<8x4xf32> -> vector<8x4xf32>
    %92 = vector.extract_strided_slice %1 {offsets = [0, 20], sizes = [8, 4], strides = [1, 1]} : vector<8x96xf32> to vector<8x4xf32>
    %93 = vector.extract_strided_slice %1 {offsets = [0, 52], sizes = [8, 4], strides = [1, 1]} : vector<8x96xf32> to vector<8x4xf32>
    %94 = vector.extract_strided_slice %1 {offsets = [0, 84], sizes = [8, 4], strides = [1, 1]} : vector<8x96xf32> to vector<8x4xf32>
    %95 = tpu.transpose %93, [1, 0] : vector<8x4xf32> -> vector<4x8xf32>
    %cst_26 = arith.constant dense<0.000000e+00> : vector<8x8xf32>
    %96 = tpu.matmul %92, %95, %cst_26 {dimension_numbers = #tpu.dot_dimension_numbers<[1], [0], [0], [1], [0, 0, 1, 1], [], []>} : vector<8x4xf32>, vector<4x8xf32>, vector<8x8xf32> -> vector<8x8xf32>
    %cst_27 = arith.constant 5.000000e-01 : f32
    %97 = vector.broadcast %cst_27 : f32 to vector<8x8xf32>
    %98 = arith.mulf %96, %97 : vector<8x8xf32>
    %cst_28 = arith.constant dense<0xFF800000> : vector<8xf32>
    %99 = vector.multi_reduction <maximumf>, %98, %cst_28 [1] : vector<8x8xf32> to vector<8xf32>
    %100 = vector.shape_cast %99 : vector<8xf32> to vector<8x1xf32>
    %101 = vector.broadcast %100 : vector<8x1xf32> to vector<8x8xf32>
    %102 = arith.subf %98, %101 : vector<8x8xf32>
    %103 = math.exp %102 : vector<8x8xf32>
    %cst_29 = arith.constant dense<0.000000e+00> : vector<8xf32>
    %104 = vector.multi_reduction <add>, %103, %cst_29 [1] : vector<8x8xf32> to vector<8xf32>
    %105 = vector.shape_cast %104 : vector<8xf32> to vector<8x1xf32>
    %106 = tpu.reciprocal %105 {approx = true} : vector<8x1xf32> -> vector<8x1xf32>
    %107 = vector.broadcast %106 : vector<8x1xf32> to vector<8x8xf32>
    %108 = arith.mulf %103, %107 : vector<8x8xf32>
    %cst_30 = arith.constant dense<0.000000e+00> : vector<8x4xf32>
    %109 = tpu.matmul %108, %94, %cst_30 {dimension_numbers = #tpu.dot_dimension_numbers<[1], [0], [0], [1], [0, 0, 1, 1], [], []>} : vector<8x8xf32>, vector<8x4xf32>, vector<8x4xf32> -> vector<8x4xf32>
    %110 = vector.extract_strided_slice %1 {offsets = [0, 24], sizes = [8, 4], strides = [1, 1]} : vector<8x96xf32> to vector<8x4xf32>
    %111 = vector.extract_strided_slice %1 {offsets = [0, 56], sizes = [8, 4], strides = [1, 1]} : vector<8x96xf32> to vector<8x4xf32>
    %112 = vector.extract_strided_slice %1 {offsets = [0, 88], sizes = [8, 4], strides = [1, 1]} : vector<8x96xf32> to vector<8x4xf32>
    %113 = tpu.transpose %111, [1, 0] : vector<8x4xf32> -> vector<4x8xf32>
    %cst_31 = arith.constant dense<0.000000e+00> : vector<8x8xf32>
    %114 = tpu.matmul %110, %113, %cst_31 {dimension_numbers = #tpu.dot_dimension_numbers<[1], [0], [0], [1], [0, 0, 1, 1], [], []>} : vector<8x4xf32>, vector<4x8xf32>, vector<8x8xf32> -> vector<8x8xf32>
    %cst_32 = arith.constant 5.000000e-01 : f32
    %115 = vector.broadcast %cst_32 : f32 to vector<8x8xf32>
    %116 = arith.mulf %114, %115 : vector<8x8xf32>
    %cst_33 = arith.constant dense<0xFF800000> : vector<8xf32>
    %117 = vector.multi_reduction <maximumf>, %116, %cst_33 [1] : vector<8x8xf32> to vector<8xf32>
    %118 = vector.shape_cast %117 : vector<8xf32> to vector<8x1xf32>
    %119 = vector.broadcast %118 : vector<8x1xf32> to vector<8x8xf32>
    %120 = arith.subf %116, %119 : vector<8x8xf32>
    %121 = math.exp %120 : vector<8x8xf32>
    %cst_34 = arith.constant dense<0.000000e+00> : vector<8xf32>
    %122 = vector.multi_reduction <add>, %121, %cst_34 [1] : vector<8x8xf32> to vector<8xf32>
    %123 = vector.shape_cast %122 : vector<8xf32> to vector<8x1xf32>
    %124 = tpu.reciprocal %123 {approx = true} : vector<8x1xf32> -> vector<8x1xf32>
    %125 = vector.broadcast %124 : vector<8x1xf32> to vector<8x8xf32>
    %126 = arith.mulf %121, %125 : vector<8x8xf32>
    %cst_35 = arith.constant dense<0.000000e+00> : vector<8x4xf32>
    %127 = tpu.matmul %126, %112, %cst_35 {dimension_numbers = #tpu.dot_dimension_numbers<[1], [0], [0], [1], [0, 0, 1, 1], [], []>} : vector<8x8xf32>, vector<8x4xf32>, vector<8x4xf32> -> vector<8x4xf32>
    %128 = vector.extract_strided_slice %1 {offsets = [0, 28], sizes = [8, 4], strides = [1, 1]} : vector<8x96xf32> to vector<8x4xf32>
    %129 = vector.extract_strided_slice %1 {offsets = [0, 60], sizes = [8, 4], strides = [1, 1]} : vector<8x96xf32> to vector<8x4xf32>
    %130 = vector.extract_strided_slice %1 {offsets = [0, 92], sizes = [8, 4], strides = [1, 1]} : vector<8x96xf32> to vector<8x4xf32>
    %131 = tpu.transpose %129, [1, 0] : vector<8x4xf32> -> vector<4x8xf32>
    %cst_36 = arith.constant dense<0.000000e+00> : vector<8x8xf32>
    %132 = tpu.matmul %128, %131, %cst_36 {dimension_numbers = #tpu.dot_dimension_numbers<[1], [0], [0], [1], [0, 0, 1, 1], [], []>} : vector<8x4xf32>, vector<4x8xf32>, vector<8x8xf32> -> vector<8x8xf32>
    %cst_37 = arith.constant 5.000000e-01 : f32
    %133 = vector.broadcast %cst_37 : f32 to vector<8x8xf32>
    %134 = arith.mulf %132, %133 : vector<8x8xf32>
    %cst_38 = arith.constant dense<0xFF800000> : vector<8xf32>
    %135 = vector.multi_reduction <maximumf>, %134, %cst_38 [1] : vector<8x8xf32> to vector<8xf32>
    %136 = vector.shape_cast %135 : vector<8xf32> to vector<8x1xf32>
    %137 = vector.broadcast %136 : vector<8x1xf32> to vector<8x8xf32>
    %138 = arith.subf %134, %137 : vector<8x8xf32>
    %139 = math.exp %138 : vector<8x8xf32>
    %cst_39 = arith.constant dense<0.000000e+00> : vector<8xf32>
    %140 = vector.multi_reduction <add>, %139, %cst_39 [1] : vector<8x8xf32> to vector<8xf32>
    %141 = vector.shape_cast %140 : vector<8xf32> to vector<8x1xf32>
    %142 = tpu.reciprocal %141 {approx = true} : vector<8x1xf32> -> vector<8x1xf32>
    %143 = vector.broadcast %142 : vector<8x1xf32> to vector<8x8xf32>
    %144 = arith.mulf %139, %143 : vector<8x8xf32>
    %cst_40 = arith.constant dense<0.000000e+00> : vector<8x4xf32>
    %145 = tpu.matmul %144, %130, %cst_40 {dimension_numbers = #tpu.dot_dimension_numbers<[1], [0], [0], [1], [0, 0, 1, 1], [], []>} : vector<8x8xf32>, vector<8x4xf32>, vector<8x4xf32> -> vector<8x4xf32>
    %146 = tpu.concatenate %19, %37, %55, %73, %91, %109, %127, %145 in 1 : vector<8x4xf32>, vector<8x4xf32>, vector<8x4xf32>, vector<8x4xf32>, vector<8x4xf32>, vector<8x4xf32>, vector<8x4xf32>, vector<8x4xf32> -> vector<8x32xf32>
    %c0_41 = arith.constant 0 : index
    %c0_42 = arith.constant 0 : index
    %c0_43 = arith.constant 0 : index
    %147 = vector.load %arg2[%c0_41, %c0_42, %c0_43] : memref<1x8x32xf32, #tpu.memory_space<vmem>>, vector<1x8x32xf32>
    %148 = vector.shape_cast %147 : vector<1x8x32xf32> to vector<8x32xf32>
    %149 = vector.shape_cast %146 : vector<8x32xf32> to vector<1x8x32xf32>
    tpu.vector_store %arg2[%c0_41, %c0_42, %c0_43], %149 {strides = array<i32>} : memref<1x8x32xf32, #tpu.memory_space<vmem>>, vector<1x8x32xf32>,
    return
  }
  func.func @transform_0(%arg0: i32) -> (i32, i32, i32) {
    %c0_i32 = arith.constant 0 : i32
    %c0_i32_0 = arith.constant 0 : i32
    %c0_i32_1 = arith.constant 0 : i32
    return %arg0, %c0_i32, %c0_i32_0 : i32, i32, i32
  }
  func.func @transform_1(%arg0: i32) -> (i32, i32, i32) {
    %c0_i32 = arith.constant 0 : i32
    %c0_i32_0 = arith.constant 0 : i32
    %c0_i32_1 = arith.constant 0 : i32
    return %arg0, %c0_i32, %c0_i32_0 : i32, i32, i32
  }
}

</mosaic_0001>

<bundles_post_ra>
// kernel: attention3d_forward.3
= control target key start
LH: loop header
LB: loop body
LE: loop exit
PB: predicated region body
PF: predicated region fallthrough
CT: control target
= control target key end

     0   :  { %8 = vsyncpa [#allocation4], 0  ;;  %s311_s0 = inlined_call_operand.hbm [shape: f32[16,32], index: 0, kind: input, shape index: {}]   ;;  %s312_s1 = inlined_call_operand.hbm [shape: f32[32,96], index: 1, kind: input, shape index: {}]   ;;  %s313_s2 = inlined_call_operand.vmem [shape: f32[1,96], index: 2, kind: input, shape index: {}]   ;;  %s314_s3 = inlined_call_operand.vmem [shape: f32[16,96], index: 3, kind: output, shape index: {}]  }
   0x1   :  { %9 = vsyncpa [#allocation6], 0  ;;  %s247_s12 = smov [#allocation3]   ;;  %s199_s16 = scalar_lea.hbm %s311_s0, 256 }
   0x2   :  { %s15_s13 = sshll.u32 %s247_s12, 4  ;;  %p200_p0 = scmp.ne.s32.totalorder %s311_s0, %s199_s16  ;;  %s16_s13 = int_to_ptr.vmem [resolvable:$true] %s15_s13 }
   0x3   :  { %p203_p1 = scmp.lt.u32.totalorder %s199_s16, %s311_s0 }
   0x5   :  { %p205_p2 = pnand %p203_p1, %p200_p0 }
   0x7   :  { %208 = shalt.err (!%p205_p2)
}
   0x8   :  { %s209_s21 = scalar_lea.vmem %s16_s13, 256  ;;  %p214_p4 = scmp.lt.s32.totalorder %s16_s13, %s16_s13 }
   0x9   :  { %p210_p3 = scmp.ne.s32.totalorder %s16_s13, %s209_s21  ;;  %p215_p5 = scmp.lt.s32.totalorder %s209_s21, %s209_s21 }
   0xb   :  { %p216_p6 = por %p215_p5, %p214_p4 }
   0xd   :  { %p217_p7 = pnand %p216_p6, %p210_p3 }
   0xf   :  { %220 = shalt.err (!%p217_p7)
}
  0x10   :  { %s248_s22 = smov 128   ;;  %s249_s23 = smov 8  }
  0x11   :  { %21 = dma.hbm_to_vmem [thread:$0]  %s311_s0, 256, %s16_s13, [#allocation4], %s248_s22, %s248_s22, %s249_s23  }
  0x12   :  { %s250_s26 = smov [#allocation5]   ;;  %s221_s30 = scalar_lea.hbm %s312_s1, 512 }
  0x13   :  { %s27_s27 = sshll.u32 %s250_s26, 4  ;;  %p222_p8 = scmp.ne.s32.totalorder %s312_s1, %s221_s30  ;;  %s28_s27 = int_to_ptr.vmem [resolvable:$true] %s27_s27 }
  0x14   :  { %p225_p9 = scmp.lt.u32.totalorder %s221_s30, %s312_s1 }
  0x16   :  { %p227_p10 = pnand %p225_p9, %p222_p8 }
  0x18   :  { %230 = shalt.err (!%p227_p10)
}
  0x19   :  { %s231_s8 = scalar_lea.vmem %s28_s27, 512  ;;  %p236_p12 = scmp.lt.s32.totalorder %s28_s27, %s28_s27 }
  0x1a   :  { %p232_p11 = scmp.ne.s32.totalorder %s28_s27, %s231_s8  ;;  %p237_p13 = scmp.lt.s32.totalorder %s231_s8, %s231_s8 }
  0x1c   :  { %p238_p0 = por %p237_p13, %p236_p12 }
  0x1e   :  { %p239_p1 = pnand %p238_p0, %p232_p11 }
  0x20   :  { %242 = shalt.err (!%p239_p1)
}
  0x21   :  { %33 = dma.hbm_to_vmem [thread:$0]  %s312_s1, 512, %s28_s27, [#allocation6], %s248_s22, %s248_s22, %s249_s23  }
  0x22   :  { %243 = dma.done.wait [#allocation4], 256  }
  0x23   :  { %244 = vsyncadd [#allocation4], 4294967040 }
  0x24   :  { %245 = dma.done.wait [#allocation6], 512  }
  0x25   :  { %246 = vsyncadd [#allocation6], 4294966784  ;;  %vm46_vm0 = vcmask 785408   ;;  %v251_v0 = vmov 0.0   ;;  %vm57_vm1 = vcmask 261120   ;;  %v53_v1 = vld [vmem:[#allocation5] sm:$0xff] }
  0x26   :  { %48 = vst.msk [vmem:[#allocation2 + $0x8] sm:$0xff] %vm46_vm0, %v251_v0  ;;  %47 = vst.msk [vmem:[#allocation2] sm:$0xff] %vm46_vm0, %v251_v0  ;;  %v54_v2 = vld [vmem:[#allocation5 + $0x8] sm:$0xff]  ;;  %v55_v3 = vld [vmem:[#allocation5 + $0x10] sm:$0xff] }
  0x27   :  { %v186_v4 = vpack.c.bf16 %v54_v2, %v53_v1  ;;  %v56_v5 = vld [vmem:[#allocation5 + $0x18] sm:$0xff]  ;;  %v51_v6 = vld [vmem:[#allocation3] sm:$0xff]  ;;  %v168_v15 = vld [vmem:[%s313_s2] ss:$0 sm:$0xff] }
  0x28   :  { %v190_v7 = vpack.c.bf16 %v56_v5, %v55_v3  ;;  %183 = vmatprep.mubr.msk.f32.mxu0 %vm57_vm1, %v51_v6  ;;  %v52_v8 = vld [vmem:[#allocation3 + $0x8] sm:$0xff] }
  0x29   :  { %187 = vmatprep.subr.bf16.mxu0 %v186_v4 }
  0x2a   :  { %189 = vmatpush3.bf16.msra.mxu0 %v186_v4 }
  0x2b   :  { %191 = vmatprep.subr.bf16.mxu0 %v190_v7 }
  0x2d   :  { %v50_v9 = vld [vmem:[#allocation2 + $0x8] sm:$0xff]  ;;  %v49_v10 = vld [vmem:[#allocation2] sm:$0xff] }
  0x2e   :  { %193 = vmatpush3.bf16.msra.mxu0 %v190_v7 }
  0x31   :  { %184 = vmatmul.mubr.msk.f32.vlgmr.msra.gmra.mrb[0].mxu0 %vm57_vm1, %v52_v8 }
 0x104   :  { %v185_v11 = vpop.f32.mrb[0].mxu0 }
 0x105   :  { %v140_v12 = vadd.f32 %v185_v11, %v50_v9  ;;  %v130_v13 = vpop.f32.mrb[1].mxu0 }
 0x106   :  { %v139_v14 = vadd.f32 %v130_v13, %v49_v10 }
 0x107   :  { %143 = vst.msk [vmem:[#allocation2 + $0x8] sm:$0xff] %vm46_vm0, %v140_v12 }
 0x108   :  { %142 = vst.msk [vmem:[#allocation2] sm:$0xff] %vm46_vm0, %v139_v14 }
 0x10e   :  { %v148_v16 = vld [vmem:[#allocation2 + $0x8] sm:$0xff] }
 0x10f   :  { %v157_v17 = vadd.f32 %v168_v15, %v148_v16  ;;  %v147_v18 = vld [vmem:[#allocation2] sm:$0xff] }
 0x110   :  { %v156_v19 = vadd.f32 %v168_v15, %v147_v18 }
 0x111   :  { %159 = vst.msk [vmem:[%s314_s3 + $0x8] sm:$0xff] %vm46_vm0, %v157_v17 }
 0x112   :  { %158 = vst.msk [vmem:[%s314_s3] sm:$0xff] %vm46_vm0, %v156_v19 }
 0x113   :  { %164 = vsyncpa [#allocation4], 1 }
 0x114   :  { %165 = vsyncpa [#allocation6], 1 }

// kernel: attention3d_forward.5
= control target key start
LH: loop header
LB: loop body
LE: loop exit
PB: predicated region body
PF: predicated region fallthrough
CT: control target
= control target key end

     0   :  { %vm19_vm0 = vcmask 261120   ;;  %v204_v6 = vmov 0.0   ;;  %s269_s0 = inlined_call_operand.vmem [shape: f32[16,32], index: 0, kind: input, shape index: {}]   ;;  %s270_s1 = inlined_call_operand.vmem [shape: f32[32,32], index: 1, kind: input, shape index: {}]   ;;  %s271_s2 = inlined_call_operand.vmem [shape: f32[1,32], index: 2, kind: input, shape index: {}]   ;;  %s272_s3 = inlined_call_operand.hbm [shape: f32[16,32], index: 3, kind: output, shape index: {}]  }
   0x1   :  { %v26_v0 = vld [vmem:[%s270_s1] sm:$0xff]  ;;  %v27_v1 = vld [vmem:[%s270_s1 + $0x8] sm:$0xff]  ;;  %v28_v2 = vld [vmem:[%s270_s1 + $0x10] sm:$0xff]  ;;  %21 = vst.msk [vmem:[#allocation2 + $0x8] sm:$0xff] %vm19_vm0, %v204_v6 }
   0x2   :  { %v168_v3 = vpack.c.bf16 %v27_v1, %v26_v0  ;;  %v29_v4 = vld [vmem:[%s270_s1 + $0x18] sm:$0xff]  ;;  %v24_v5 = vld [vmem:[%s269_s0] sm:$0xff]  ;;  %20 = vst.msk [vmem:[#allocation2] sm:$0xff] %vm19_vm0, %v204_v6 }
   0x3   :  { %v172_v7 = vpack.c.bf16 %v29_v4, %v28_v2  ;;  %165 = vmatprep.mubr.msk.f32.mxu0 %vm19_vm0, %v24_v5 }
   0x4   :  { %8 = vsyncpa [#allocation4], 0  ;;  %169 = vmatprep.subr.bf16.mxu0 %v168_v3  ;;  %v25_v8 = vld [vmem:[%s269_s0 + $0x8] sm:$0xff]  ;;  %v150_v15 = vld [vmem:[%s271_s2] ss:$0 sm:$0xff]  ;;  %s205_s25 = smov [#allocation3]  }
   0x5   :  { %171 = vmatpush3.bf16.msra.mxu0 %v168_v3  ;;  %s137_s26 = sshll.u32 %s205_s25, 4  ;;  %s138_s26 = int_to_ptr.vmem [resolvable:$true] %s137_s26 }
   0x6   :  { %173 = vmatprep.subr.bf16.mxu0 %v172_v7  ;;  %s180_s0 = scalar_lea.vmem %s138_s26, 256  ;;  %p185_p1 = scmp.lt.s32.totalorder %s138_s26, %s138_s26 }
   0x7   :  { %p181_p0 = scmp.ne.s32.totalorder %s138_s26, %s180_s0  ;;  %p186_p2 = scmp.lt.s32.totalorder %s180_s0, %s180_s0 }
   0x8   :  { %v23_v9 = vld [vmem:[#allocation2 + $0x8] sm:$0xff] }
   0x9   :  { %175 = vmatpush3.bf16.msra.mxu0 %v172_v7  ;;  %v22_v10 = vld [vmem:[#allocation2] sm:$0xff]  ;;  %p187_p3 = por %p186_p2, %p185_p1 }
   0xb   :  { %p188_p4 = pnand %p187_p3, %p181_p0 }
   0xc   :  { %166 = vmatmul.mubr.msk.f32.vlgmr.msra.gmra.mrb[0].mxu0 %vm19_vm0, %v25_v8 }
  0xdf   :  { %v167_v11 = vpop.f32.mrb[0].mxu0 }
  0xe0   :  { %v113_v12 = vadd.f32 %v167_v11, %v23_v9  ;;  %v103_v13 = vpop.f32.mrb[1].mxu0 }
  0xe1   :  { %v112_v14 = vadd.f32 %v103_v13, %v22_v10 }
  0xe2   :  { %115 = vst.msk [vmem:[#allocation2 + $0x8] sm:$0xff] %vm19_vm0, %v113_v12 }
  0xe3   :  { %114 = vst.msk [vmem:[#allocation2] sm:$0xff] %vm19_vm0, %v112_v14 }
  0xe9   :  { %v120_v16 = vld [vmem:[#allocation2 + $0x8] sm:$0xff] }
  0xea   :  { %v119_v17 = vld [vmem:[#allocation2] sm:$0xff]  ;;  %v129_v18 = vadd.f32 %v150_v15, %v120_v16 }
  0xeb   :  { %v128_v19 = vadd.f32 %v150_v15, %v119_v17 }
  0xec   :  { %131 = vst.msk [vmem:[#allocation3 + $0x8] sm:$0xff] %vm19_vm0, %v129_v18 }
  0xed   :  { %130 = vst.msk [vmem:[#allocation3] sm:$0xff] %vm19_vm0, %v128_v19 }
  0xee   :  { %191 = shalt.err (!%p188_p4)
}
  0xef   :  { %s192_s28 = scalar_lea.hbm %s272_s3, 256 }
  0xf0   :  { %p193_p5 = scmp.ne.s32.totalorder %s272_s3, %s192_s28  ;;  %p196_p6 = scmp.lt.u32.totalorder %s192_s28, %s272_s3 }
  0xf2   :  { %p198_p7 = pnand %p196_p6, %p193_p5 }
  0xf4   :  { %201 = shalt.err (!%p198_p7)
}
  0xf5   :  { %s206_s6 = smov 128   ;;  %s207_s7 = smov 8  }
  0xf6   :  { %143 = dma.vmem_to_hbm [thread:$0]  %s138_s26, 256, %s272_s3, [#allocation4], %s206_s6, %s206_s6, %s207_s7  }
  0xf7   :  { %202 = dma.done.wait [#allocation4], 256  }
  0xf8   :  { %203 = vsyncadd [#allocation4], 4294967040 }
  0xf9   :  { %147 = vsyncpa [#allocation4], 1 }

// kernel: attention3d_forward.4
= control target key start
LH: loop header
LB: loop body
LE: loop exit
PB: predicated region body
PF: predicated region fallthrough
CT: control target
= control target key end

     0   :  { %s1804_s6 = smov 0   ;;  %s1955_s0 = inlined_call_operand.vmem [shape: f32[2,8,96], index: 0, kind: input, shape index: {}]   ;;  %s1956_s1 = inlined_call_operand.vmem [shape: f32[2,8,32], index: 1, kind: output, shape index: {}]  }
   0x1 LB: > { %s1537_s7 = sadd.s32 4294967295, %s1760_s6   ;;  %p1541_p0 = scmp.ge.s32.totalorder %s1760_s6, 1  ;;  %s1760_s6 = sphi %s1804_s6, %s11_s6  }
   0x2   : > { %p86_p1 = scmp.lt.s32.totalorder %s1760_s6, 3 }
   0x4   : > { %p87_p2 = pnand %p1541_p0, %p86_p1 }
   0x5   : > { %p104_p3 = scmp.lt.s32.totalorder (!%p87_p2), %s1537_s7, 1  ;;  %v1762_v0 = vmov (!%p87_p2), 0.0   ;;  %vm1763_vm0 = vmmov (!%p87_p2), 0   ;;  %s1764_s12 = smov (!%p87_p2), 96   ;;  %vm116_vm1 = vcmask (!%p87_p2), 31744   ;;  %vm192_vm2 = vcmask (!%p87_p2), 64512  }
   0x6   : > { %90 = sbr.rel (%p87_p2) target bundleno = 1593 (0x639), region = 24  ;;  %1602 = vmatprep.subr.mxu0 (!%p87_p2), %v1762_v0  ;;  %1604 = vmatprep.mubr.msk.f32.mxu0 (!%p87_p2), %vm1763_vm0, %v1762_v0  ;;  %s1765_s13 = smov (!%p87_p2), 64   ;;  %vm1472_vm3 = vcmask (!%p87_p2), 97280   ;;  %vm1474_vm4 = vcmask (!%p87_p2), 130048   ;;  %vm1476_vm5 = vcmask (!%p87_p2), 162816   ;;  %vm1478_vm6 = vcmask (!%p87_p2), 195584  }
   0x7   : > { %1607 = vmatprep.subr.mxu1 (!%p87_p2), %v1762_v0  ;;  %1609 = vmatprep.mubr.msk.f32.mxu1 (!%p87_p2), %vm1763_vm0, %v1762_v0  ;;  %s1766_s14 = smov (!%p87_p2), 92   ;;  %s1767_s15 = smov (!%p87_p2), 124   ;;  %vm1480_vm7 = vcmask (!%p87_p2), 228352   ;;  %vm1482_vm8 = vcmask (!%p87_p2), 261120  }
   0x8   : > { %s1768_s16 = smov (!%p87_p2), 88   ;;  %s1769_s17 = smov (!%p87_p2), 120  }
   0x9   : > { %s1770_s18 = smov (!%p87_p2), 116   ;;  %s1771_s19 = smov (!%p87_p2), 84  }
   0xa   : > { %s1772_s20 = smov (!%p87_p2), 72   ;;  %s1773_s21 = smov (!%p87_p2), 68  }
   0xb   : > { %s1774_s22 = smov (!%p87_p2), 80   ;;  %s1775_s23 = smov (!%p87_p2), 112  }
   0xc   : > { %s1776_s24 = smov (!%p87_p2), 76   ;;  %s1777_s25 = smov (!%p87_p2), 108  }
   0xd   : > { %s1958_s7 = smov (!%p104_p3, %s1537_s7), 1  ;;  %s1778_s26 = smov 104  }
   0xe   : > { %s1542_s8 = sshll.u32 %s1958_s7, 3  ;;  %s1779_s27 = smov 100  }
   0xf   : > { %s107_s11 = scalar_lea.vmem %s1955_s0, %s1542_s8  ;;  %s1780_s28 = smov 60  }
  0x10   : > { %v1826_v1 = vld [vmem:[%s107_s11] sm:$0xff]  ;;  %s1781_s29 = smov 56   ;;  %s1782_s30 = smov 52  }
  0x11   : > { %114 = vrot.lane.b32.xlu0 %v1826_v1, %s1764_s12  ;;  %204 = vrot.lane.b32.xlu1 %v1826_v1, %s1765_s13  ;;  %s1783_s2 = smov 48   ;;  %s1784_s3 = smov 44  }
  0x12   : > { %s1785_s4 = smov 40   ;;  %s1786_s5 = smov 36  }
  0x13   : > { %s1787_s9 = smov 4   ;;  %s1788_s10 = smov 8  }
  0x14   : > { %s1789_s11 = smov 12   ;;  %s1790_s12 = smov 16  }
  0x15   : > { %282 = vrot.lane.b32.xlu1 %v1826_v1, %s1766_s14  ;;  %s1791_s13 = smov 20   ;;  %s1792_s14 = smov 24  }
  0x19   : > { %280 = vrot.lane.b32.xlu1 %v1826_v1, %s1767_s15  ;;  %s1793_s15 = smov 28  }
  0x1d   : > { %448 = vrot.lane.b32.xlu1 %v1826_v1, %s1768_s16 }
  0x21   : > { %446 = vrot.lane.b32.xlu1 %v1826_v1, %s1769_s17 }
  0x25   : > { %612 = vrot.lane.b32.xlu1 %v1826_v1, %s1770_s18  ;;  %s111_s18 = scalar_lea.vmem %s1956_s1, %s1542_s8 }
  0x83   : > { %v115_v2 = vpop.permute.xlu0 %114  ;;  %v205_v7 = vpop.permute.xlu1 %204 }
  0x84   : > { %1603 = vmatpush3.xpose.msk.msra.mxu0 %vm116_vm1, %v115_v2  ;;  %1608 = vmatpush3.msra.mxu1 %v205_v7 }
  0x85   : > { %1617 = vmatprep.subr.mxu0 %v1762_v0  ;;  %1612 = vmatprep.subr.mxu1 %v1762_v0 }
  0x87   : > { %1605 = vmatmul.mubr.msk.f32.vlgmr.msra.gmra.mrb[0].mxu0 %vm116_vm1, %v1826_v1  ;;  %v283_v13 = vpop.permute.xlu1 %282 }
  0x88   : > { %1619 = vmatprep.mubr.msk.f32.mxu0 %vm1763_vm0, %v1762_v0 }
  0x8b   : > { %v281_v14 = vpop.permute.xlu1 %280 }
  0x8f   : > { %v449_v15 = vpop.permute.xlu1 %448 }
  0x93   : > { %v447_v16 = vpop.permute.xlu1 %446 }
  0x97   : > { %v613_v17 = vpop.permute.xlu1 %612 }
 0x15a   : > { %v187_v3 = vpop.f32.mrb[0].mxu0 }
 0x15b   : > { %v191_v4 = vmul.f32 0.5, %v187_v3  ;;  %v1606_v5 = vpop.f32.mrb[1].mxu0 }
 0x15d   : > { %v193_v6 = vsel %vm192_vm2, %v191_v4, -inf }
 0x15e   : > { %194 = vmax.xlane.f32.xlu0 %v193_v6 }
 0x174   : > { %614 = vrot.lane.b32.xlu0 %v1826_v1, %s1771_s19 }
 0x178   : > { %1112 = vrot.lane.b32.xlu0 %v1826_v1, %s1772_s20 }
 0x17c   : > { %1278 = vrot.lane.b32.xlu0 %v1826_v1, %s1773_s21 }
 0x1eb   : > { %v195_v8 = vpop.xlane.xlu0 %194 }
 0x1ec   : > { %v196_v9 = vsub.f32 %v191_v4, %v195_v8 }
 0x1ee   : > { %v197_v10 = vmul.f32 1.442695, %v196_v9 }
 0x1ef   : > { %v615_v23 = vpop.permute.xlu0 %614 }
 0x1f0   : > { %1722 = vpow2.f32 %v197_v10 }
 0x1f3   : > { %v1113_v26 = vpop.permute.xlu0 %1112 }
 0x1f7   : > { %v1279_v28 = vpop.permute.xlu0 %1278 }
 0x1fa   : > { %v1723_v11 = vpop.eup %1722 }
 0x1fb   : > { %v199_v12 = vsel %vm192_vm2, %v1723_v11, 0.0 }
 0x1fc   : > { %200 = vadd.xlane.f32.xlu1 %v199_v12 }
 0x20d   : > { %780 = vrot.lane.b32.xlu1 %v1826_v1, %s1774_s22 }
 0x211   : > { %778 = vrot.lane.b32.xlu1 %v1826_v1, %s1775_s23 }
 0x215   : > { %946 = vrot.lane.b32.xlu1 %v1826_v1, %s1776_s24 }
 0x219   : > { %944 = vrot.lane.b32.xlu1 %v1826_v1, %s1777_s25 }
 0x21d   : > { %1110 = vrot.lane.b32.xlu1 %v1826_v1, %s1778_s26 }
 0x221   : > { %1276 = vrot.lane.b32.xlu1 %v1826_v1, %s1779_s27 }
 0x289   : > { %v201_v18 = vpop.xlane.xlu1 %200 }
 0x28a   : > { %1724 = vrcp.f32 %v201_v18 }
 0x28d   : > { %v781_v19 = vpop.permute.xlu1 %780 }
 0x291   : > { %v779_v22 = vpop.permute.xlu1 %778 }
 0x294   : > { %v1725_v20 = vpop.eup %1724 }
 0x295   : > { %v203_v21 = vmul.f32 %v1725_v20, %v1723_v11  ;;  %v947_v24 = vpop.permute.xlu1 %946 }
 0x297   : > { %1610 = vmatmul.mubr.msk.f32.vlgmr.msra.gmra.mrb[0].mxu1 %vm192_vm2, %v203_v21 }
 0x298   : > { %1613 = vmatpush3.xpose.msk.msra.mxu1 %vm116_vm1, %v283_v13  ;;  %1614 = vmatprep.mubr.msk.f32.mxu1 %vm1763_vm0, %v1762_v0 }
 0x299   : > { %1622 = vmatprep.subr.mxu1 %v1762_v0  ;;  %v945_v25 = vpop.permute.xlu1 %944 }
 0x29b   : > { %1615 = vmatmul.mubr.msk.f32.vlgmr.msra.gmra.mrb[2].mxu1 %vm116_vm1, %v281_v14 }
 0x29c   : > { %1623 = vmatpush3.xpose.msk.msra.mxu1 %vm116_vm1, %v449_v15  ;;  %1624 = vmatprep.mubr.msk.f32.mxu1 %vm1763_vm0, %v1762_v0 }
 0x29d   : > { %1632 = vmatprep.subr.mxu1 %v1762_v0  ;;  %v1111_v27 = vpop.permute.xlu1 %1110 }
 0x29f   : > { %1625 = vmatmul.mubr.msk.f32.vlgmr.msra.gmra.mrb[4].mxu1 %vm116_vm1, %v447_v16 }
 0x2a0   : > { %1633 = vmatpush3.xpose.msk.msra.mxu1 %vm116_vm1, %v615_v23  ;;  %1634 = vmatprep.mubr.msk.f32.mxu1 %vm1763_vm0, %v1762_v0 }
 0x2a1   : > { %1642 = vmatprep.subr.mxu1 %v1762_v0  ;;  %v1277_v29 = vpop.permute.xlu1 %1276 }
 0x2a3   : > { %1635 = vmatmul.mubr.msk.f32.vlgmr.msra.gmra.mrb[6].mxu1 %vm116_vm1, %v613_v17 }
 0x2a4   : > { %1643 = vmatpush3.xpose.msk.msra.mxu1 %vm116_vm1, %v781_v19  ;;  %1644 = vmatprep.mubr.msk.f32.mxu1 %vm1763_vm0, %v1762_v0 }
 0x2a5   : > { %1652 = vmatprep.subr.mxu1 %v1762_v0 }
 0x2a7   : > { %1645 = vmatmul.mubr.msk.f32.vlgmr.msra.gmra.mrb[8].mxu1 %vm116_vm1, %v779_v22 }
 0x2a8   : > { %1653 = vmatpush3.xpose.msk.msra.mxu1 %vm116_vm1, %v947_v24  ;;  %1654 = vmatprep.mubr.msk.f32.mxu1 %vm1763_vm0, %v1762_v0 }
 0x2a9   : > { %1662 = vmatprep.subr.mxu1 %v1762_v0 }
 0x2ab   : > { %1655 = vmatmul.mubr.msk.f32.vlgmr.msra.gmra.mrb[10].mxu1 %vm116_vm1, %v945_v25 }
 0x2ac   : > { %1663 = vmatpush3.xpose.msk.msra.mxu1 %vm116_vm1, %v1113_v26  ;;  %1664 = vmatprep.mubr.msk.f32.mxu1 %vm1763_vm0, %v1762_v0 }
 0x2ad   : > { %1672 = vmatprep.subr.mxu1 %v1762_v0 }
 0x2af   : > { %1665 = vmatmul.mubr.msk.f32.vlgmr.msra.gmra.mrb[12].mxu1 %vm116_vm1, %v1111_v27 }
 0x2b0   : > { %1673 = vmatpush3.xpose.msk.msra.mxu1 %vm116_vm1, %v1279_v28  ;;  %1674 = vmatprep.mubr.msk.f32.mxu1 %vm1763_vm0, %v1762_v0 }
 0x2b3   : > { %1675 = vmatmul.mubr.msk.f32.vlgmr.msra.gmra.mrb[14].mxu1 %vm116_vm1, %v1277_v29 }
 0x36a   : > { %v1888_v30 = vpop.f32.mrb[0].mxu1 }
 0x36b   : > { %v1611_v31 = vpop.f32.mrb[1].mxu1 }
 0x36e   : > { %v354_v32 = vpop.f32.mrb[2].mxu1 }
 0x36f   : > { %v358_v33 = vmul.f32 0.5, %v354_v32  ;;  %v1616_v34 = vpop.f32.mrb[3].mxu1 }
 0x371   : > { %v359_v35 = vsel %vm192_vm2, %v358_v33, -inf }
 0x372   : > { %360 = vmax.xlane.f32.xlu0 %v359_v35  ;;  %v520_v36 = vpop.f32.mrb[4].mxu1 }
 0x373   : > { %v524_v37 = vmul.f32 0.5, %v520_v36  ;;  %v1626_v38 = vpop.f32.mrb[5].mxu1 }
 0x375   : > { %v525_v39 = vsel %vm192_vm2, %v524_v37, -inf }
 0x376   : > { %526 = vmax.xlane.f32.xlu1 %v525_v39  ;;  %v686_v40 = vpop.f32.mrb[6].mxu1 }
 0x377   : > { %v690_v41 = vmul.f32 0.5, %v686_v40  ;;  %v1636_v42 = vpop.f32.mrb[7].mxu1 }
 0x379   : > { %v691_v43 = vsel %vm192_vm2, %v690_v41, -inf }
 0x37a   : > { %692 = vmax.xlane.f32.xlu0 %v691_v43  ;;  %v852_v44 = vpop.f32.mrb[8].mxu1 }
 0x37b   : > { %v856_v45 = vmul.f32 0.5, %v852_v44  ;;  %v1646_v46 = vpop.f32.mrb[9].mxu1 }
 0x37d   : > { %v857_v47 = vsel %vm192_vm2, %v856_v45, -inf }
 0x37e   : > { %858 = vmax.xlane.f32.xlu0 %v857_v47  ;;  %v1018_v48 = vpop.f32.mrb[10].mxu1 }
 0x37f   : > { %v1894_v49 = vmul.f32 0.5, %v1018_v48  ;;  %v1656_v50 = vpop.f32.mrb[11].mxu1 }
 0x381   : > { %v1023_v51 = vsel %vm192_vm2, %v1894_v49, -inf }
 0x382   : > { %1024 = vmax.xlane.f32.xlu1 %v1023_v51  ;;  %v1184_v52 = vpop.f32.mrb[12].mxu1 }
 0x383   : > { %v1188_v53 = vmul.f32 0.5, %v1184_v52  ;;  %v1666_v54 = vpop.f32.mrb[13].mxu1 }
 0x385   : > { %v1189_v55 = vsel %vm192_vm2, %v1188_v53, -inf }
 0x386   : > { %1190 = vmax.xlane.f32.xlu0 %v1189_v55  ;;  %v1350_v56 = vpop.f32.mrb[14].mxu1 }
 0x387   : > { %v1354_v57 = vmul.f32 0.5, %v1350_v56  ;;  %v1676_v58 = vpop.f32.mrb[15].mxu1 }
 0x389   : > { %v1355_v59 = vsel %vm192_vm2, %v1354_v57, -inf }
 0x38a   : > { %1356 = vmax.xlane.f32.xlu1 %v1355_v59 }
 0x39b   : > { %370 = vrot.lane.b32.xlu1 %v1826_v1, %s1780_s28 }
 0x39c   : > { %536 = vrot.lane.b32.xlu0 %v1826_v1, %s1781_s29 }
 0x39f   : > { %702 = vrot.lane.b32.xlu1 %v1826_v1, %s1782_s30 }
 0x3a3   : > { %868 = vrot.lane.b32.xlu1 %v1826_v1, %s1783_s2 }
 0x3ff   : > { %v361_v60 = vpop.xlane.xlu0 %360 }
 0x400   : > { %v362_v61 = vsub.f32 %v358_v33, %v361_v60 }
 0x402   : > { %v363_v62 = vmul.f32 1.442695, %v362_v61 }
 0x403   : > { %v527_v63 = vpop.xlane.xlu1 %526 }
 0x404   : > { %1726 = vpow2.f32 %v363_v62  ;;  %v528_v2 = vsub.f32 %v524_v37, %v527_v63 }
 0x406   : > { %v529_v3 = vmul.f32 1.442695, %v528_v2 }
 0x407   : > { %v693_v4 = vpop.xlane.xlu0 %692 }
 0x408   : > { %1728 = vpow2.f32 %v529_v3  ;;  %v694_v5 = vsub.f32 %v690_v41, %v693_v4 }
 0x40a   : > { %v695_v6 = vmul.f32 1.442695, %v694_v5 }
 0x40b   : > { %v859_v7 = vpop.xlane.xlu0 %858 }
 0x40c   : > { %1730 = vpow2.f32 %v695_v6  ;;  %v860_v8 = vsub.f32 %v856_v45, %v859_v7 }
 0x40e   : > { %v1727_v9 = vpop.eup %1726  ;;  %v861_v10 = vmul.f32 1.442695, %v860_v8 }
 0x40f   : > { %v365_v11 = vsel %vm192_vm2, %v1727_v9, 0.0  ;;  %v1025_v13 = vpop.xlane.xlu1 %1024 }
 0x410   : > { %1732 = vpow2.f32 %v861_v10  ;;  %366 = vadd.xlane.f32.xlu0 %v365_v11  ;;  %v1026_v26 = vsub.f32 %v1894_v49, %v1025_v13 }
 0x412   : > { %v1729_v12 = vpop.eup %1728  ;;  %v1027_v27 = vmul.f32 1.442695, %v1026_v26 }
 0x413   : > { %v1191_v14 = vpop.xlane.xlu0 %1190  ;;  %v531_v15 = vsel %vm192_vm2, %v1729_v12, 0.0 }
 0x414   : > { %v1192_v16 = vsub.f32 %v1188_v53, %v1191_v14  ;;  %532 = vadd.xlane.f32.xlu1 %v531_v15 }
 0x416   : > { %v1731_v17 = vpop.eup %1730  ;;  %v1193_v18 = vmul.f32 1.442695, %v1192_v16 }
 0x417   : > { %v1357_v19 = vpop.xlane.xlu1 %1356  ;;  %v697_v20 = vsel %vm192_vm2, %v1731_v17, 0.0  ;;  %v537_v36 = vpop.permute.xlu0 %536 }
 0x418   : > { %1734 = vpow2.f32 %v1193_v18  ;;  %698 = vadd.xlane.f32.xlu0 %v697_v20  ;;  %v1358_v28 = vsub.f32 %v1354_v57, %v1357_v19 }
 0x419   : > { %1736 = vpow2.f32 %v1027_v27 }
 0x41a   : > { %v1733_v21 = vpop.eup %1732  ;;  %v1359_v29 = vmul.f32 1.442695, %v1358_v28 }
 0x41b   : > { %v863_v22 = vsel %vm192_vm2, %v1733_v21, 0.0  ;;  %v371_v23 = vpop.permute.xlu1 %370 }
 0x41c   : > { %864 = vadd.xlane.f32.xlu1 %v863_v22  ;;  %1618 = vmatpush3.msra.mxu0 %v371_v23  ;;  %1738 = vpow2.f32 %v1359_v29 }
 0x41d   : > { %1627 = vmatprep.subr.mxu0 %v1762_v0 }
 0x41f   : > { %v703_v35 = vpop.permute.xlu1 %702 }
 0x422   : > { %v1909_v24 = vpop.eup %1734 }
 0x423   : > { %v1195_v25 = vsel %vm192_vm2, %v1909_v24, 0.0  ;;  %v1737_v31 = vpop.eup %1736  ;;  %v869_v37 = vpop.permute.xlu1 %868 }
 0x424   : > { %1196 = vadd.xlane.f32.xlu1 %v1195_v25  ;;  %v1029_v32 = vsel %vm192_vm2, %v1737_v31, 0.0 }
 0x426   : > { %v1739_v33 = vpop.eup %1738 }
 0x427   : > { %v1361_v34 = vsel %vm192_vm2, %v1739_v33, 0.0 }
 0x42e   : > { %1034 = vrot.lane.b32.xlu0 %v1826_v1, %s1784_s3 }
 0x435   : > { %1200 = vrot.lane.b32.xlu1 %v1826_v1, %s1785_s4 }
 0x44d   : > { %1030 = vadd.xlane.f32.xlu0 %v1029_v32 }
 0x451   : > { %1362 = vadd.xlane.f32.xlu0 %v1361_v34 }
 0x467   : > { %1366 = vrot.lane.b32.xlu0 %v1826_v1, %s1786_s5 }
 0x49d   : > { %v367_v38 = vpop.xlane.xlu0 %366 }
 0x49e   : > { %1740 = vrcp.f32 %v367_v38 }
 0x4a1   : > { %v533_v39 = vpop.xlane.xlu1 %532 }
 0x4a2   : > { %1742 = vrcp.f32 %v533_v39 }
 0x4a5   : > { %v699_v40 = vpop.xlane.xlu0 %698 }
 0x4a6   : > { %1744 = vrcp.f32 %v699_v40 }
 0x4a8   : > { %v1741_v41 = vpop.eup %1740 }
 0x4a9   : > { %v369_v42 = vmul.f32 %v1741_v41, %v1727_v9  ;;  %v865_v43 = vpop.xlane.xlu1 %864  ;;  %v1035_v49 = vpop.permute.xlu0 %1034 }
 0x4aa   : > { %1746 = vrcp.f32 %v865_v43 }
 0x4ab   : > { %1620 = vmatmul.mubr.msk.f32.vlgmr.msra.gmra.mrb[2].mxu0 %vm192_vm2, %v369_v42 }
 0x4ac   : > { %v1743_v44 = vpop.eup %1742  ;;  %1628 = vmatpush3.msra.mxu0 %v537_v36  ;;  %1629 = vmatprep.mubr.msk.f32.mxu0 %vm1763_vm0, %v1762_v0 }
 0x4ad   : > { %v535_v1 = vmul.f32 %v1743_v44, %v1729_v12  ;;  %1637 = vmatprep.subr.mxu0 %v1762_v0 }
 0x4af   : > { %1630 = vmatmul.mubr.msk.f32.vlgmr.msra.gmra.mrb[4].mxu0 %vm192_vm2, %v535_v1 }
 0x4b0   : > { %v1745_v45 = vpop.eup %1744  ;;  %1638 = vmatpush3.msra.mxu0 %v703_v35  ;;  %1639 = vmatprep.mubr.msk.f32.mxu0 %vm1763_vm0, %v1762_v0 }
 0x4b1   : > { %v701_v46 = vmul.f32 %v1745_v45, %v1731_v17  ;;  %1647 = vmatprep.subr.mxu0 %v1762_v0  ;;  %v1197_v50 = vpop.xlane.xlu1 %1196 }
 0x4b3   : > { %1640 = vmatmul.mubr.msk.f32.vlgmr.msra.gmra.mrb[6].mxu0 %vm192_vm2, %v701_v46 }
 0x4b4   : > { %v1747_v47 = vpop.eup %1746  ;;  %1648 = vmatpush3.msra.mxu0 %v869_v37  ;;  %1649 = vmatprep.mubr.msk.f32.mxu0 %vm1763_vm0, %v1762_v0 }
 0x4b5   : > { %v867_v48 = vmul.f32 %v1747_v47, %v1733_v21  ;;  %1657 = vmatprep.subr.mxu0 %v1762_v0  ;;  %v1201_v55 = vpop.permute.xlu1 %1200 }
 0x4b7   : > { %1650 = vmatmul.mubr.msk.f32.vlgmr.msra.gmra.mrb[8].mxu0 %vm192_vm2, %v867_v48 }
 0x4b8   : > { %1658 = vmatpush3.msra.mxu0 %v1035_v49  ;;  %1659 = vmatprep.mubr.msk.f32.mxu0 %vm1763_vm0, %v1762_v0 }
 0x4b9   : > { %1667 = vmatprep.subr.mxu0 %v1762_v0 }
 0x4da   : > { %v1031_v51 = vpop.xlane.xlu0 %1030 }
 0x4db   : > { %1748 = vrcp.f32 %v1031_v51 }
 0x4dc   : > { %1750 = vrcp.f32 %v1197_v50 }
 0x4de   : > { %v1363_v52 = vpop.xlane.xlu0 %1362 }
 0x4df   : > { %1752 = vrcp.f32 %v1363_v52 }
 0x4e2   : > { %v1367_v58 = vpop.permute.xlu0 %1366 }
 0x4e5   : > { %v1749_v53 = vpop.eup %1748 }
 0x4e6   : > { %v1033_v54 = vmul.f32 %v1749_v53, %v1737_v31  ;;  %v1751_v56 = vpop.eup %1750 }
 0x4e7   : > { %v1199_v57 = vmul.f32 %v1751_v56, %v1909_v24 }
 0x4e8   : > { %1660 = vmatmul.mubr.msk.f32.vlgmr.msra.gmra.mrb[10].mxu0 %vm192_vm2, %v1033_v54 }
 0x4e9   : > { %1668 = vmatpush3.msra.mxu0 %v1201_v55  ;;  %1669 = vmatprep.mubr.msk.f32.mxu0 %vm1763_vm0, %v1762_v0  ;;  %v1753_v59 = vpop.eup %1752 }
 0x4ea   : > { %1677 = vmatprep.subr.mxu0 %v1762_v0  ;;  %v1365_v60 = vmul.f32 %v1753_v59, %v1739_v33 }
 0x4ec   : > { %1670 = vmatmul.mubr.msk.f32.vlgmr.msra.gmra.mrb[12].mxu0 %vm192_vm2, %v1199_v57 }
 0x4ed   : > { %1678 = vmatpush3.msra.mxu0 %v1367_v58  ;;  %1679 = vmatprep.mubr.msk.f32.mxu0 %vm1763_vm0, %v1762_v0 }
 0x4f0   : > { %1680 = vmatmul.mubr.msk.f32.vlgmr.msra.gmra.mrb[14].mxu0 %vm192_vm2, %v1365_v60 }
 0x57e   : > { %v442_v61 = vpop.f32.mrb[2].mxu0 }
 0x57f   : > { %1443 = vrot.lane.b32.xlu1 %v442_v61, %s1787_s9  ;;  %v1621_v62 = vpop.f32.mrb[3].mxu0 }
 0x582   : > { %v608_v63 = vpop.f32.mrb[4].mxu0 }
 0x583   : > { %1447 = vrot.lane.b32.xlu0 %v608_v63, %s1788_s10  ;;  %v1631_v2 = vpop.f32.mrb[5].mxu0 }
 0x586   : > { %v774_v3 = vpop.f32.mrb[6].mxu0 }
 0x587   : > { %1451 = vrot.lane.b32.xlu1 %v774_v3, %s1789_s11  ;;  %v1641_v4 = vpop.f32.mrb[7].mxu0 }
 0x58a   : > { %v940_v5 = vpop.f32.mrb[8].mxu0 }
 0x58b   : > { %1455 = vrot.lane.b32.xlu0 %v940_v5, %s1790_s12  ;;  %v1651_v6 = vpop.f32.mrb[9].mxu0 }
 0x5bb   : > { %v1106_v0 = vpop.f32.mrb[10].mxu0 }
 0x5bc   : > { %1459 = vrot.lane.b32.xlu1 %v1106_v0, %s1791_s13  ;;  %v1661_v7 = vpop.f32.mrb[11].mxu0 }
 0x5bf   : > { %v1272_v8 = vpop.f32.mrb[12].mxu0 }
 0x5c0   : > { %1463 = vrot.lane.b32.xlu0 %v1272_v8, %s1792_s14  ;;  %v1671_v9 = vpop.f32.mrb[13].mxu0 }
 0x5c3   : > { %v1438_v10 = vpop.f32.mrb[14].mxu0 }
 0x5c4   : > { %1467 = vrot.lane.b32.xlu1 %v1438_v10, %s1793_s15  ;;  %v1681_v11 = vpop.f32.mrb[15].mxu0 }
 0x5f1   : > { %v1444_v12 = vpop.permute.xlu1 %1443 }
 0x5f2   : > { %v1470_v16 = vsel %vm116_vm1, %v1888_v30, %v1444_v12 }
 0x5f5   : > { %v1448_v13 = vpop.permute.xlu0 %1447 }
 0x5f6   : > { %v1471_v17 = vsel %vm192_vm2, %v1470_v16, %v1448_v13 }
 0x5f9   : > { %v1452_v14 = vpop.permute.xlu1 %1451 }
 0x5fa   : > { %v1473_v19 = vsel %vm1472_vm3, %v1471_v17, %v1452_v14 }
 0x5fd   : > { %v1456_v15 = vpop.permute.xlu0 %1455 }
 0x5fe   : > { %v1475_v21 = vsel %vm1474_vm4, %v1473_v19, %v1456_v15 }
 0x62e   : > { %v1460_v18 = vpop.permute.xlu1 %1459 }
 0x62f   : > { %v1477_v22 = vsel %vm1476_vm5, %v1475_v21, %v1460_v18 }
 0x632   : > { %v1464_v20 = vpop.permute.xlu0 %1463 }
 0x633   : > { %v1479_v23 = vsel %vm1478_vm6, %v1477_v22, %v1464_v20 }
 0x636   : > { %v1468_v24 = vpop.permute.xlu1 %1467 }
 0x637   : > { %v1481_v30 = vsel %vm1480_vm7, %v1479_v23, %v1468_v24 }
 0x638   : > { %1483 = vst.msk [vmem:[%s111_s18] sm:$0xff] %vm1482_vm8, %v1481_v30 }
 0x639 PF: > { %s11_s6 = sadd.s32 1, %s1760_s6  }
 0x63a   : > { %p8_p4 = scmp.ge.s32.totalorder %s11_s6, 4  }
 0x63c   :  { %10 = sbr.rel (!%p8_p4) target bundleno = 1 (0x1), region = 54 }

</bundles_post_ra>
